<compile_context>
chip_gen: v7x
topology: tpu7x:2x2x1
jax: 0.10.0
libtpu: 0.0.40
codegen_flags: <defaults>
</compile_context>

<pallas_src>
import jax
import jax.numpy as jnp
from jax.experimental import pallas as pl
from jax.experimental.pallas import tpu as pltpu


def lstm_cell_kernel(x_ref, h_ref, c_ref, wx_ref, wh_ref, b_ref, out_ref):
    """One fused cell step for a (TB, *) batch tile.

    x_ref  : (TB, input_size)
    h_ref  : (TB, H)   hidden state
    c_ref  : (TB, H)   cell state
    wx_ref : (input_size, 4H)  gate order [i, f, o, n] along 4H (layers 1-4)
    wh_ref : (H, 4H)           gate order [i, f, o, n] along 4H (layers 5-8)
    b_ref  : (1, 4H)           packed bias (bx + bh)
    out_ref: (TB, 2H)  packed output [ht | ct]
    """
    H = c_ref.shape[1]

    # Two accumulating MXU dots over the (small) contraction axes, f32 accumulation,
    # bias folded in as the epilogue add (broadcast happens once, no loop).
    gates = (
        jnp.dot(x_ref[...], wx_ref[...], preferred_element_type=jnp.float32)
        + jnp.dot(h_ref[...], wh_ref[...], preferred_element_type=jnp.float32)
        + b_ref[...]
    )  # (TB, 4H); with H=32, 4H=128 -> lane-dense

    # One contiguous sigmoid over [i|f|o] (single long EUP stream), tanh on n.
    ifo = jax.nn.sigmoid(gates[:, : 3 * H])
    i_gate = ifo[:, 0 * H:1 * H]   # layer1 + layer5
    f_gate = ifo[:, 1 * H:2 * H]   # layer2 + layer6
    o_gate = ifo[:, 2 * H:3 * H]   # layer3 + layer7
    n_cell = jnp.tanh(gates[:, 3 * H:4 * H])   # layer4 + layer8

    # f32 epilogue (keep off bf16 even if MXU operands are narrowed later).
    ct = f_gate * c_ref[...] + i_gate * n_cell
    ht = o_gate * jnp.tanh(ct)

    # Direct slice stores into the packed output block — no concat temp.
    out_ref[:, :H] = ht.astype(out_ref.dtype)
    out_ref[:, H:] = ct.astype(out_ref.dtype)


def _batch_tile(batch: int) -> int:
    """Pick the batch tile: as large as possible (cap 1024, multiple of 8),
    but >= 2 grid steps when B allows so the parallel axis can split across the
    two TensorCores on v7x."""
    cap = 1024
    if batch <= 8:
        return batch                      # single block (== full array dim is legal)
    half = -(-batch // 2)                 # ceil(B / 2) -> at least a 2-step grid
    half = ((half + 7) // 8) * 8          # round up to a multiple of 8 sublanes
    return min(half, cap)


def my_cell_forward(x, h, c, wx, wh, b):
    """Fused MyCell forward. Returns (ht, ct).

    x: (B, input_size), h/c: (B, H)
    wx: (input_size, 4H), wh: (H, 4H)  gate order [i, f, o, n]
    b : (1, 4H)                        packed bias (bx + bh)
    """
    B, in_size = x.shape
    H = h.shape[1]

    TB = _batch_tile(B)
    grid = (pl.cdiv(B, TB),)

    out = pl.pallas_call(
        lstm_cell_kernel,
        out_shape=jax.ShapeDtypeStruct((B, 2 * H), jnp.float32),
        grid_spec=pltpu.PrefetchScalarGridSpec(
            num_scalar_prefetch=0,
            grid=grid,
            in_specs=[
                pl.BlockSpec((TB, in_size), lambda i: (i, 0)),   # x : tiled over batch
                pl.BlockSpec((TB, H), lambda i: (i, 0)),         # h : tiled over batch
                pl.BlockSpec((TB, H), lambda i: (i, 0)),         # c : tiled over batch
                pl.BlockSpec((in_size, 4 * H), lambda i: (0, 0)),  # Wx: resident
                pl.BlockSpec((H, 4 * H), lambda i: (0, 0)),        # Wh: resident
                pl.BlockSpec((1, 4 * H), lambda i: (0, 0)),        # b : resident
            ],
            out_specs=pl.BlockSpec((TB, 2 * H), lambda i: (i, 0)),
        ),
        compiler_params=pltpu.CompilerParams(
            dimension_semantics=("parallel",),
        ),
    )(x, h, c, wx, wh, b)

    ht = out[:, :H]
    ct = out[:, H:]
    return ht, ct


def init_params(key, input_size, hidden_size):
    """Deterministic synthetic parameters (PyTorch-like uniform init),
    pre-packed for the fused kernel:
      wx = [W1|W2|W3|W4] (input_size, 4H), wh = [W5|W6|W7|W8] (H, 4H),
      b  = bx + bh (1, 4H).  Gate order along 4H: [i, f, o, new_cell]."""
    keys = jax.random.split(key, 4)
    bound_x = 1.0 / jnp.sqrt(input_size)
    bound_h = 1.0 / jnp.sqrt(hidden_size)
    # layers 1-4: input_size -> hidden, concatenated over the gate axis
    wx = jax.random.uniform(keys[0], (input_size, 4 * hidden_size),
                            minval=-bound_x, maxval=bound_x, dtype=jnp.float32)
    bx = jax.random.uniform(keys[1], (1, 4 * hidden_size),
                            minval=-bound_x, maxval=bound_x, dtype=jnp.float32)
    # layers 5-8: hidden -> hidden, concatenated over the gate axis
    wh = jax.random.uniform(keys[2], (hidden_size, 4 * hidden_size),
                            minval=-bound_h, maxval=bound_h, dtype=jnp.float32)
    bh = jax.random.uniform(keys[3], (1, 4 * hidden_size),
                            minval=-bound_h, maxval=bound_h, dtype=jnp.float32)
    b = bx + bh  # the two biases always add in the forward
    return wx, wh, b


def reference_forward(x, h, c, wx, wh, b):
    H = h.shape[1]
    gates = x @ wx + h @ wh + b
    i = jax.nn.sigmoid(gates[:, 0 * H:1 * H])
    f = jax.nn.sigmoid(gates[:, 1 * H:2 * H])
    o = jax.nn.sigmoid(gates[:, 2 * H:3 * H])
    nc = jnp.tanh(gates[:, 3 * H:4 * H])
    ct = f * c + i * nc
    ht = o * jnp.tanh(ct)
    return ht, ct


if __name__ == "__main__":
    B, INPUT_SIZE, HIDDEN_SIZE = 8, 16, 32

    key = jax.random.PRNGKey(0)
    k_x, k_p = jax.random.split(key)

    x = jax.random.normal(k_x, (B, INPUT_SIZE), dtype=jnp.float32)
    # hx=None path of the PyTorch module: zero initial states (f32; TPU has no f64)
    h0 = jnp.zeros((B, HIDDEN_SIZE), dtype=jnp.float32)
    c0 = jnp.zeros((B, HIDDEN_SIZE), dtype=jnp.float32)

    wx, wh, b = init_params(k_p, INPUT_SIZE, HIDDEN_SIZE)

    ht, ct = my_cell_forward(x, h0, c0, wx, wh, b)
    jax.block_until_ready((ht, ct))

    ht_ref, ct_ref = reference_forward(x, h0, c0, wx, wh, b)
    assert jnp.allclose(ht, ht_ref, atol=1e-5, rtol=1e-5)
    assert jnp.allclose(ct, ct_ref, atol=1e-5, rtol=1e-5)

    print("KERNEL_OK")
</pallas_src>

<mosaic_0001>
module attributes {stable_mosaic.version = 11 : i64} {
  func.func @lstm_cell_kernel(%arg0: i32, %arg1: memref<8x16xf32, #tpu.memory_space<vmem>>, %arg2: memref<8x32xf32, #tpu.memory_space<vmem>>, %arg3: memref<8x32xf32, #tpu.memory_space<vmem>>, %arg4: memref<16x128xf32, #tpu.memory_space<vmem>>, %arg5: memref<32x128xf32, #tpu.memory_space<vmem>>, %arg6: memref<1x128xf32, #tpu.memory_space<vmem>>, %arg7: memref<8x64xf32, #tpu.memory_space<vmem>>) attributes {dimension_semantics = [#tpu.dimension_semantics<parallel>], iteration_bounds = array<i64: 1>, scalar_prefetch = 0 : i64, scratch_operands = 0 : i64, tpu.core_type = #tpu.core_type<tc>, window_params = [{transform_indices = @transform_0, window_bounds = array<i64: 8, 16>}, {transform_indices = @transform_1, window_bounds = array<i64: 8, 32>}, {transform_indices = @transform_2, window_bounds = array<i64: 8, 32>}, {pipeline_mode = #tpu.pipeline_mode<synchronous>, transform_indices = @transform_3, window_bounds = array<i64: 16, 128>}, {pipeline_mode = #tpu.pipeline_mode<synchronous>, transform_indices = @transform_4, window_bounds = array<i64: 32, 128>}, {pipeline_mode = #tpu.pipeline_mode<synchronous>, transform_indices = @transform_5, window_bounds = array<i64: 1, 128>}, {transform_indices = @transform_6, window_bounds = array<i64: 8, 64>}]} {
    %c0 = arith.constant 0 : index
    %c0_0 = arith.constant 0 : index
    %0 = vector.load %arg1[%c0, %c0_0] : memref<8x16xf32, #tpu.memory_space<vmem>>, vector<8x16xf32>
    %c0_1 = arith.constant 0 : index
    %c0_2 = arith.constant 0 : index
    %1 = vector.load %arg4[%c0_1, %c0_2] : memref<16x128xf32, #tpu.memory_space<vmem>>, vector<16x128xf32>
    %cst = arith.constant dense<0.000000e+00> : vector<8x128xf32>
    %2 = tpu.matmul %0, %1, %cst {dimension_numbers = #tpu.dot_dimension_numbers<[1], [0], [0], [1], [0, 0, 1, 1], [], []>} : vector<8x16xf32>, vector<16x128xf32>, vector<8x128xf32> -> vector<8x128xf32>
    %c0_3 = arith.constant 0 : index
    %c0_4 = arith.constant 0 : index
    %3 = vector.load %arg2[%c0_3, %c0_4] : memref<8x32xf32, #tpu.memory_space<vmem>>, vector<8x32xf32>
    %c0_5 = arith.constant 0 : index
    %c0_6 = arith.constant 0 : index
    %4 = vector.load %arg5[%c0_5, %c0_6] : memref<32x128xf32, #tpu.memory_space<vmem>>, vector<32x128xf32>
    %cst_7 = arith.constant dense<0.000000e+00> : vector<8x128xf32>
    %5 = tpu.matmul %3, %4, %cst_7 {dimension_numbers = #tpu.dot_dimension_numbers<[1], [0], [0], [1], [0, 0, 1, 1], [], []>} : vector<8x32xf32>, vector<32x128xf32>, vector<8x128xf32> -> vector<8x128xf32>
    %6 = arith.addf %2, %5 : vector<8x128xf32>
    %c0_8 = arith.constant 0 : index
    %c0_9 = arith.constant 0 : index
    %7 = vector.load %arg6[%c0_8, %c0_9] : memref<1x128xf32, #tpu.memory_space<vmem>>, vector<1x128xf32>
    %8 = vector.broadcast %7 : vector<1x128xf32> to vector<8x128xf32>
    %9 = arith.addf %6, %8 : vector<8x128xf32>
    %10 = vector.extract_strided_slice %9 {offsets = [0, 0], sizes = [8, 96], strides = [1, 1]} : vector<8x128xf32> to vector<8x96xf32>
    %11 = arith.negf %10 : vector<8x96xf32>
    %12 = math.exp %11 : vector<8x96xf32>
    %cst_10 = arith.constant 1.000000e+00 : f32
    %13 = vector.broadcast %cst_10 : f32 to vector<8x96xf32>
    %14 = arith.addf %13, %12 : vector<8x96xf32>
    %15 = arith.divf %13, %14 : vector<8x96xf32>
    %16 = vector.extract_strided_slice %15 {offsets = [0, 0], sizes = [8, 32], strides = [1, 1]} : vector<8x96xf32> to vector<8x32xf32>
    %17 = vector.extract_strided_slice %15 {offsets = [0, 32], sizes = [8, 32], strides = [1, 1]} : vector<8x96xf32> to vector<8x32xf32>
    %18 = vector.extract_strided_slice %15 {offsets = [0, 64], sizes = [8, 32], strides = [1, 1]} : vector<8x96xf32> to vector<8x32xf32>
    %19 = vector.extract_strided_slice %9 {offsets = [0, 96], sizes = [8, 32], strides = [1, 1]} : vector<8x128xf32> to vector<8x32xf32>
    %20 = math.tanh %19 : vector<8x32xf32>
    %c0_11 = arith.constant 0 : index
    %c0_12 = arith.constant 0 : index
    %21 = vector.load %arg3[%c0_11, %c0_12] : memref<8x32xf32, #tpu.memory_space<vmem>>, vector<8x32xf32>
    %22 = arith.mulf %17, %21 : vector<8x32xf32>
    %23 = arith.mulf %16, %20 : vector<8x32xf32>
    %24 = arith.addf %22, %23 : vector<8x32xf32>
    %25 = math.tanh %24 : vector<8x32xf32>
    %26 = arith.mulf %18, %25 : vector<8x32xf32>
    %c0_13 = arith.constant 0 : index
    %c0_14 = arith.constant 0 : index
    %27 = vector.load %arg7[%c0_13, %c0_14] : memref<8x64xf32, #tpu.memory_space<vmem>>, vector<8x32xf32>
    tpu.vector_store %arg7[%c0_13, %c0_14], %26 {strides = array<i32>} : memref<8x64xf32, #tpu.memory_space<vmem>>, vector<8x32xf32>,
    %c0_15 = arith.constant 0 : index
    %c32 = arith.constant 32 : index
    %28 = vector.load %arg7[%c0_15, %c32] : memref<8x64xf32, #tpu.memory_space<vmem>>, vector<8x32xf32>
    tpu.vector_store %arg7[%c0_15, %c32], %24 {strides = array<i32>} : memref<8x64xf32, #tpu.memory_space<vmem>>, vector<8x32xf32>,
    return
  }
  func.func @transform_0(%arg0: i32) -> (i32, i32) {
    %c0_i32 = arith.constant 0 : i32
    %c0_i32_0 = arith.constant 0 : i32
    return %arg0, %c0_i32 : i32, i32
  }
  func.func @transform_1(%arg0: i32) -> (i32, i32) {
    %c0_i32 = arith.constant 0 : i32
    %c0_i32_0 = arith.constant 0 : i32
    return %arg0, %c0_i32 : i32, i32
  }
  func.func @transform_2(%arg0: i32) -> (i32, i32) {
    %c0_i32 = arith.constant 0 : i32
    %c0_i32_0 = arith.constant 0 : i32
    return %arg0, %c0_i32 : i32, i32
  }
  func.func @transform_3(%arg0: i32) -> (i32, i32) {
    %c0_i32 = arith.constant 0 : i32
    %c0_i32_0 = arith.constant 0 : i32
    %c0_i32_1 = arith.constant 0 : i32
    return %c0_i32, %c0_i32_0 : i32, i32
  }
  func.func @transform_4(%arg0: i32) -> (i32, i32) {
    %c0_i32 = arith.constant 0 : i32
    %c0_i32_0 = arith.constant 0 : i32
    %c0_i32_1 = arith.constant 0 : i32
    return %c0_i32, %c0_i32_0 : i32, i32
  }
  func.func @transform_5(%arg0: i32) -> (i32, i32) {
    %c0_i32 = arith.constant 0 : i32
    %c0_i32_0 = arith.constant 0 : i32
    %c0_i32_1 = arith.constant 0 : i32
    return %c0_i32, %c0_i32_0 : i32, i32
  }
  func.func @transform_6(%arg0: i32) -> (i32, i32) {
    %c0_i32 = arith.constant 0 : i32
    %c0_i32_0 = arith.constant 0 : i32
    return %arg0, %c0_i32 : i32, i32
  }
}

</mosaic_0001>

<bundles_post_ra>
// kernel: tpu_custom_call.1
= control target key start
LH: loop header
LB: loop body
LE: loop exit
PB: predicated region body
PF: predicated region fallthrough
CT: control target
= control target key end

     0   :  { %11 = vsyncpa [#allocation3], 0  ;;  %s641_s0 = inlined_call_operand.hbm [shape: f32[8,16], index: 0, kind: input, shape index: {}]   ;;  %s642_s1 = inlined_call_operand.hbm [shape: f32[8,32], index: 1, kind: input, shape index: {}]   ;;  %s643_s2 = inlined_call_operand.hbm [shape: f32[8,32], index: 2, kind: input, shape index: {}]   ;;  %s644_s3 = inlined_call_operand.hbm [shape: f32[16,128], index: 3, kind: input, shape index: {}]   ;;  %s645_s4 = inlined_call_operand.hbm [shape: f32[32,128], index: 4, kind: input, shape index: {}]   ;;  %s646_s5 = inlined_call_operand.vmem [shape: f32[1,128], index: 5, kind: input, shape index: {}]   ;;  %s647_s6 = inlined_call_operand.hbm [shape: f32[8,64], index: 6, kind: output, shape index: {}]  }
   0x1   :  { %12 = vsyncpa [#allocation6], 0 }
   0x2   :  { %13 = vsyncpa [#allocation9], 0 }
   0x3   :  { %14 = vsyncpa [#allocation4], 0  ;;  %s503_s21 = smov [#allocation5]   ;;  %s504_s23 = smov [#allocation8]  }
   0x4   :  { %s31_s22 = sshll.u32 %s503_s21, 4  ;;  %s50_s24 = sshll.u32 %s504_s23, 4  ;;  %s32_s22 = int_to_ptr.vmem [resolvable:$true] %s31_s22  ;;  %s551_s24 = int_to_ptr.vmem [resolvable:$true] %s50_s24 }
   0x5   :  { %s363_s27 = scalar_lea.hbm %s642_s1, 128 }
   0x6   :  { %p364_p0 = scmp.ne.s32.totalorder %s642_s1, %s363_s27  ;;  %p367_p1 = scmp.lt.u32.totalorder %s363_s27, %s642_s1 }
   0x8   :  { %p369_p2 = pnand %p367_p1, %p364_p0 }
   0xa   :  { %372 = shalt.err (!%p369_p2)
}
   0xb   :  { %s373_s8 = scalar_lea.vmem %s32_s22, 128  ;;  %p378_p4 = scmp.lt.s32.totalorder %s32_s22, %s32_s22 }
   0xc   :  { %p374_p3 = scmp.ne.s32.totalorder %s32_s22, %s373_s8  ;;  %p379_p5 = scmp.lt.s32.totalorder %s373_s8, %s373_s8 }
   0xe   :  { %p380_p6 = por %p379_p5, %p378_p4 }
  0x10   :  { %p381_p7 = pnand %p380_p6, %p374_p3 }
  0x12   :  { %384 = shalt.err (!%p381_p7)
}
  0x13   :  { %34 = dma.hbm_to_vmem [thread:$0]  %s642_s1, 128, %s32_s22, [#allocation6]  }
  0x14   :  { %s385_s13 = scalar_lea.hbm %s644_s3, 256 }
  0x15   :  { %p386_p8 = scmp.ne.s32.totalorder %s644_s3, %s385_s13  ;;  %p389_p9 = scmp.lt.u32.totalorder %s385_s13, %s644_s3 }
  0x17   :  { %p391_p10 = pnand %p389_p9, %p386_p8 }
  0x19   :  { %394 = shalt.err (!%p391_p10)
}
  0x1a   :  { %s395_s18 = scalar_lea.vmem %s551_s24, 256  ;;  %p400_p12 = scmp.lt.s32.totalorder %s551_s24, %s551_s24 }
  0x1b   :  { %p396_p11 = scmp.ne.s32.totalorder %s551_s24, %s395_s18  ;;  %p401_p13 = scmp.lt.s32.totalorder %s395_s18, %s395_s18 }
  0x1d   :  { %p402_p0 = por %p401_p13, %p400_p12 }
  0x1f   :  { %p403_p1 = pnand %p402_p0, %p396_p11 }
  0x21   :  { %406 = shalt.err (!%p403_p1)
}
  0x22   :  { %s505_s1 = smov 128   ;;  %s506_s19 = smov 8  }
  0x23   :  { %56 = dma.hbm_to_vmem [thread:$0]  %s644_s3, 256, %s551_s24, [#allocation9], %s505_s1, %s505_s1, %s506_s19  }
  0x24   :  { %s507_s22 = smov [#allocation2]   ;;  %s508_s25 = smov [#allocation7]  }
  0x25   :  { %s21_s23 = sshll.u32 %s507_s22, 4  ;;  %s41_s26 = sshll.u32 %s508_s25, 4  ;;  %s22_s23 = int_to_ptr.vmem [resolvable:$true] %s21_s23  ;;  %s42_s26 = int_to_ptr.vmem [resolvable:$true] %s41_s26 }
  0x26   :  { %s407_s29 = scalar_lea.hbm %s641_s0, 128 }
  0x27   :  { %p408_p2 = scmp.ne.s32.totalorder %s641_s0, %s407_s29  ;;  %p411_p3 = scmp.lt.u32.totalorder %s407_s29, %s641_s0 }
  0x29   :  { %p413_p4 = pnand %p411_p3, %p408_p2 }
  0x2b   :  { %416 = shalt.err (!%p413_p4)
}
  0x2c   :  { %s417_s3 = scalar_lea.vmem %s22_s23, 128  ;;  %p422_p6 = scmp.lt.s32.totalorder %s22_s23, %s22_s23 }
  0x2d   :  { %p418_p5 = scmp.ne.s32.totalorder %s22_s23, %s417_s3  ;;  %p423_p7 = scmp.lt.s32.totalorder %s417_s3, %s417_s3 }
  0x2f   :  { %p424_p8 = por %p423_p7, %p422_p6 }
  0x31   :  { %p425_p9 = pnand %p424_p8, %p418_p5 }
  0x33   :  { %428 = shalt.err (!%p425_p9)
}
  0x34   :  { %24 = dma.hbm_to_vmem [thread:$0]  %s641_s0, 128, %s22_s23, [#allocation3]  }
  0x35   :  { %s429_s13 = scalar_lea.hbm %s643_s2, 128 }
  0x36   :  { %p430_p10 = scmp.ne.s32.totalorder %s643_s2, %s429_s13  ;;  %p433_p11 = scmp.lt.u32.totalorder %s429_s13, %s643_s2 }
  0x38   :  { %p435_p12 = pnand %p433_p11, %p430_p10 }
  0x3a   :  { %438 = shalt.err (!%p435_p12)
}
  0x3b   :  { %s439_s18 = scalar_lea.vmem %s42_s26, 128  ;;  %p444_p0 = scmp.lt.s32.totalorder %s42_s26, %s42_s26 }
  0x3c   :  { %p440_p13 = scmp.ne.s32.totalorder %s42_s26, %s439_s18  ;;  %p445_p1 = scmp.lt.s32.totalorder %s439_s18, %s439_s18 }
  0x3e   :  { %p446_p2 = por %p445_p1, %p444_p0 }
  0x40   :  { %p447_p3 = pnand %p446_p2, %p440_p13 }
  0x42   :  { %450 = shalt.err (!%p447_p3)
}
  0x43   :  { %44 = dma.hbm_to_vmem [thread:$0]  %s643_s2, 128, %s42_s26, [#allocation6]  }
  0x44   :  { %s509_s21 = smov [#allocation10]   ;;  %s451_s27 = scalar_lea.hbm %s645_s4, 512 }
  0x45   :  { %s62_s22 = sshll.u32 %s509_s21, 4  ;;  %p452_p4 = scmp.ne.s32.totalorder %s645_s4, %s451_s27  ;;  %s63_s22 = int_to_ptr.vmem [resolvable:$true] %s62_s22 }
  0x46   :  { %p455_p5 = scmp.lt.u32.totalorder %s451_s27, %s645_s4 }
  0x48   :  { %p457_p6 = pnand %p455_p5, %p452_p4 }
  0x4a   :  { %460 = shalt.err (!%p457_p6)
}
  0x4b   :  { %s461_s8 = scalar_lea.vmem %s63_s22, 512  ;;  %p466_p8 = scmp.lt.s32.totalorder %s63_s22, %s63_s22 }
  0x4c   :  { %p462_p7 = scmp.ne.s32.totalorder %s63_s22, %s461_s8  ;;  %p467_p9 = scmp.lt.s32.totalorder %s461_s8, %s461_s8 }
  0x4e   :  { %p468_p10 = por %p467_p9, %p466_p8 }
  0x50   :  { %p469_p11 = pnand %p468_p10, %p462_p7 }
  0x52   :  { %472 = shalt.err (!%p469_p11)
}
  0x53   :  { %68 = dma.hbm_to_vmem [thread:$0]  %s645_s4, 512, %s63_s22, [#allocation9], %s505_s1, %s505_s1, %s506_s19  }
  0x54   :  { %495 = dma.done.wait [#allocation3], 128  }
  0x55   :  { %496 = vsyncadd [#allocation3], 4294967168 }
  0x56   :  { %497 = dma.done.wait [#allocation6], 256  }
  0x57   :  { %498 = vsyncadd [#allocation6], 4294967040 }
  0x58   :  { %499 = dma.done.wait [#allocation9], 768  }
  0x59   :  { %500 = vsyncadd [#allocation9], 4294966528  ;;  %v510_v0 = vmov 0.0|0.0   ;;  %vm511_vm0 = vmmov 0   ;;  %v512_v1 = vmov 0.0   ;;  %v90_v2 = vld [vmem:[#allocation10] sm:$0xff] }
  0x5a   :  { %333 = vmatprep.subr.bf16.mxu0 %v510_v0  ;;  %339 = vmatprep.subr.bf16.mxu1 %v510_v0  ;;  %v91_v3 = vld [vmem:[#allocation10 + $0x8] sm:$0xff]  ;;  %v87_v4 = vld [vmem:[#allocation8] sm:$0xff]  ;;  %v88_v6 = vld [vmem:[#allocation8 + $0x8] sm:$0xff]  ;;  %vm168_vm1 = vcmask 130048   ;;  %vm94_vm2 = vcmask 261120   ;;  %s513_s19 = smov 32  }
  0x5b   :  { %330 = vmatprep.mubr.msk.f32.mxu1 %vm511_vm0, %v512_v1  ;;  %323 = vmatprep.mubr.msk.f32.mxu0 %vm511_vm0, %v512_v1  ;;  %v334_v5 = vpack.c.bf16 %v91_v3, %v90_v2  ;;  %v92_v7 = vld [vmem:[#allocation10 + $0x10] sm:$0xff]  ;;  %v93_v8 = vld [vmem:[#allocation10 + $0x18] sm:$0xff]  ;;  %v340_v9 = vpack.c.bf16 %v88_v6, %v87_v4  ;;  %v89_v12 = vld [vmem:[#allocation5] sm:$0xff]  ;;  %s515_s9 = smov [#allocation11]   ;;  %vm284_vm3 = vcmask 523520  }
  0x5c   :  { %v337_v10 = vpack.c.bf16 %v93_v8, %v92_v7  ;;  %v86_v11 = vld [vmem:[#allocation2] sm:$0xff]  ;;  %v257_v21 = vld [vmem:[#allocation7] sm:$0xff]  ;;  %s292_s3 = sshll.u32 %s515_s9, 4  ;;  %s293_s3 = int_to_ptr.vmem [resolvable:$true] %s292_s3 }
  0x5d   :  { %335 = vmatpush3.bf16.msra.mxu0 %v334_v5  ;;  %341 = vmatpush3.bf16.msra.mxu1 %v340_v9  ;;  %v305_v16 = vld [vmem:[%s646_s5] ss:$0 sm:$0xff]  ;;  %s514_s5 = smov 64   ;;  %s473_s24 = scalar_lea.vmem %s293_s3, 128 }
  0x5e   :  { %336 = vmatprep.subr.bf16.mxu0 %v510_v0  ;;  %p474_p12 = scmp.ne.s32.totalorder %s293_s3, %s473_s24  ;;  %p478_p13 = scmp.lt.s32.totalorder %s293_s3, %s293_s3 }
  0x5f   :  { %p479_p0 = scmp.lt.s32.totalorder %s473_s24, %s473_s24 }
  0x60   :  { %331 = vmatmul.mubr.msk.f32.vlgmr.msra.gmra.mrb[0].mxu1 %vm168_vm1, %v86_v11 }
  0x61   :  { %338 = vmatpush3.bf16.msra.mxu0 %v337_v10  ;;  %p480_p1 = por %p479_p0, %p478_p13 }
  0x63   :  { %p481_p2 = pnand %p480_p1, %p474_p12 }
  0x64   :  { %324 = vmatmul.mubr.msk.f32.vlgmr.msra.gmra.mrb[0].mxu0 %vm94_vm2, %v89_v12 }
 0x133   :  { %v238_v13 = vpop.f32.mrb[0].mxu1 }
 0x134   :  { %v332_v14 = vpop.f32.mrb[1].mxu1 }
 0x137   :  { %v164_v15 = vpop.f32.mrb[0].mxu0 }
 0x138   :  { %v239_v17 = vadd.f32 %v238_v13, %v164_v15  ;;  %v325_v18 = vpop.f32.mrb[1].mxu0 }
 0x13a   :  { %v249_v19 = vadd.f32 %v305_v16, %v239_v17 }
 0x13c   :  { %355 = vtanh.f32 %v249_v19  ;;  %v306_v22 = vmul.f32 -1.442695, %v249_v19 }
 0x13e   :  { %357 = vpow2.f32 %v306_v22 }
 0x146   :  { %v356_v20 = vpop.eup %355 }
 0x147   :  { %264 = vrot.lane.b32.xlu0 %v356_v20, %s513_s19 }
 0x148   :  { %v358_v23 = vpop.eup %357 }
 0x149   :  { %v253_v24 = vadd.f32 1.0, %v358_v23 }
 0x14b   :  { %259 = vrot.lane.b32.xlu0 %v257_v21, %s513_s19  ;;  %359 = vrcp.f32 %v253_v24 }
 0x155   :  { %v360_v25 = vpop.eup %359 }
 0x1b9   :  { %v265_v26 = vpop.permute.xlu0 %264 }
 0x1ba   :  { %v267_v27 = vmul.f32 %v360_v25, %v265_v26 }
 0x1bc   :  { %269 = vrot.lane.b32.xlu1 %v267_v27, %s513_s19 }
 0x1bd   :  { %v260_v28 = vpop.permute.xlu0 %259 }
 0x1be   :  { %v262_v29 = vmul.f32 %v360_v25, %v260_v28 }
 0x22e   :  { %v270_v30 = vpop.permute.xlu1 %269 }
 0x22f   :  { %v272_v31 = vadd.f32 %v270_v30, %v262_v29 }
 0x231   :  { %361 = vtanh.f32 %v272_v31 }
 0x23b   :  { %v362_v32 = vpop.eup %361 }
 0x23c   :  { %275 = vrot.lane.b32.xlu1 %v362_v32, %s513_s19 }
 0x2ae   :  { %v276_v33 = vpop.permute.xlu1 %275 }
 0x2af   :  { %v278_v34 = vmul.f32 %v360_v25, %v276_v33 }
 0x2b1   :  { %280 = vrot.lane.b32.xlu0 %v278_v34, %s514_s5 }
 0x323   :  { %v281_v35 = vpop.permute.xlu0 %280 }
 0x324   :  { %283 = vst.msk [vmem:[#allocation11] sm:$0xff] %vm94_vm2, %v281_v35 }
 0x325   :  { %285 = vst.msk [vmem:[#allocation11] sm:$0xff] %vm284_vm3, %v272_v31 }
 0x326   :  { %484 = shalt.err (!%p481_p2)
}
 0x327   :  { %s485_s12 = scalar_lea.hbm %s647_s6, 128 }
 0x328   :  { %p486_p3 = scmp.ne.s32.totalorder %s647_s6, %s485_s12  ;;  %p489_p4 = scmp.lt.u32.totalorder %s485_s12, %s647_s6 }
 0x32a   :  { %p491_p5 = pnand %p489_p4, %p486_p3 }
 0x32c   :  { %494 = shalt.err (!%p491_p5)
}
 0x32d   :  { %295 = dma.vmem_to_hbm [thread:$0]  %s293_s3, 128, %s647_s6, [#allocation4]  }
 0x32e   :  { %501 = dma.done.wait [#allocation4], 128  }
 0x32f   :  { %502 = vsyncadd [#allocation4], 4294967168 }
 0x330   :  { %299 = vsyncpa [#allocation3], 1 }
 0x331   :  { %300 = vsyncpa [#allocation6], 1 }
 0x332   :  { %301 = vsyncpa [#allocation9], 1 }
 0x333   :  { %302 = vsyncpa [#allocation4], 1 }

</bundles_post_ra>
